<compile_context>
chip_gen: v5e
topology: v5e:2x2
jax: 0.10.0
libtpu: 0.0.40
codegen_flags: <defaults>
</compile_context>

<pallas_src>
import jax
import jax.numpy as jnp
from jax.experimental import pallas as pl
from jax.experimental.pallas import tpu as pltpu


def _round_up(n, m):
    return ((n + m - 1) // m) * m


def _pick_batch_tile(batch, input_dim, hidden, out_dim, x_itemsize, sublane,
                     vmem_budget_bytes=12 * 1024 * 1024):
    """Largest batch tile (multiple of `sublane`, capped at 4096) whose
    double-buffered streaming working set (x tile + (tb, out_dim) f32 output
    + resident params) fits the VMEM budget."""
    tb = min(4096, _round_up(batch, sublane))
    params_bytes = 2 * 4 * (input_dim * hidden + hidden + hidden * out_dim + out_dim)

    def working_set(t):
        return (params_bytes
                + 2 * t * input_dim * x_itemsize   # streamed x (double-buffered)
                + 2 * t * out_dim * 4)             # streamed out (double-buffered)

    while tb > sublane and working_set(tb) > vmem_budget_bytes:
        tb -= sublane
    tb = max(tb, sublane)

    # v7x: keep >= 2 grid steps so the "parallel" batch axis gives both
    # TensorCores work (no-op for huge B where tb is already << B).
    if batch >= 2 * sublane:
        tb = min(tb, _round_up(-(-batch // 2), sublane))
    return tb


def domain_classifier_kernel(x_ref, w1_ref, b1_ref, w2_ref, b2_ref, o_ref):
    # Two MXU matmuls + VPU bias-add/ReLU on VMEM-resident tiles; f32 accum.
    h = jnp.dot(x_ref[...], w1_ref[...], preferred_element_type=jnp.float32)
    h = jnp.maximum(h + b1_ref[...], 0.0)            # (TB, H) + (1, H), ReLU
    out = jnp.dot(h, w2_ref[...], preferred_element_type=jnp.float32)
    o_ref[...] = (out + b2_ref[...]).astype(o_ref.dtype)   # compact (TB, 2) store


def domain_classifier(x, w1, b1, w2, b2, *, tb=None):
    """Pallas forward for DomainClassifier: Linear -> ReLU -> Linear.

    x: (B, input_dim); w1: (input_dim, hidden); b1: (1, hidden);
    w2: (hidden, out_dim); b2: (1, out_dim).  Returns (B, out_dim) float32.
    x is streamed in the dtype the caller provides (pass bf16 x yourself if
    you want half the HBM read traffic); accumulation/output stay f32.
    """
    B, input_dim = x.shape
    hidden, out_dim = w2.shape

    # Only the tiny first-layer weight is cast to match x's streaming dtype.
    if w1.dtype != x.dtype:
        w1 = w1.astype(x.dtype)

    sublane = 16 if x.dtype.itemsize == 2 else 8
    if tb is None:
        tb = _pick_batch_tile(B, input_dim, hidden, out_dim,
                              x.dtype.itemsize, sublane)
    tb = max(_round_up(tb, sublane), sublane)
    if B >= sublane:
        tb = min(tb, (B // sublane) * sublane)   # keep the block within the array

    grid = (pl.cdiv(B, tb),)   # ragged last block: OOB reads padded, OOB writes masked

    cost = pl.CostEstimate(
        flops=2 * B * (input_dim * hidden + hidden * out_dim),
        transcendentals=0,
        bytes_accessed=(B * input_dim * x.dtype.itemsize
                        + B * out_dim * 4
                        + 4 * (input_dim * hidden + hidden + hidden * out_dim + out_dim)),
    )

    out = pl.pallas_call(
        domain_classifier_kernel,
        out_shape=jax.ShapeDtypeStruct((B, out_dim), jnp.float32),
        grid=grid,
        in_specs=[
            pl.BlockSpec((tb, input_dim), lambda i: (i, 0)),      # streamed x
            pl.BlockSpec((input_dim, hidden), lambda i: (0, 0)),  # resident W1
            pl.BlockSpec((1, hidden), lambda i: (0, 0)),          # resident b1
            pl.BlockSpec((hidden, out_dim), lambda i: (0, 0)),    # resident W2
            pl.BlockSpec((1, out_dim), lambda i: (0, 0)),         # resident b2
        ],
        out_specs=pl.BlockSpec((tb, out_dim), lambda i: (i, 0)),  # compact (B, 2)
        compiler_params=pltpu.CompilerParams(
            dimension_semantics=("parallel",),      # v7x: shard batch across TCs
            vmem_limit_bytes=32 * 1024 * 1024,      # safe on v5e/v6e/v7x
        ),
        cost_estimate=cost,
    )(x, w1, b1, w2, b2)

    return out


def init_params(key, input_dim, hidden_dim, out_dim=2, dtype=jnp.float32):
    """Deterministic parameter init (PyTorch nn.Linear-style uniform bounds)."""
    k1, k2, k3, k4 = jax.random.split(key, 4)
    bound1 = 1.0 / (input_dim ** 0.5)
    bound2 = 1.0 / (hidden_dim ** 0.5)
    w1 = jax.random.uniform(k1, (input_dim, hidden_dim), dtype, -bound1, bound1)
    b1 = jax.random.uniform(k2, (1, hidden_dim), dtype, -bound1, bound1)
    w2 = jax.random.uniform(k3, (hidden_dim, out_dim), dtype, -bound2, bound2)
    b2 = jax.random.uniform(k4, (1, out_dim), dtype, -bound2, bound2)
    return w1, b1, w2, b2


def reference_forward(x, w1, b1, w2, b2):
    h = jnp.maximum(x @ w1 + b1, 0.0)
    return h @ w2 + b2


if __name__ == "__main__":
    # Small shapes consistent with the module: batch=24, input_dim=64,
    # hidden_dim=256 (the nn.Module default), out_dim=2.
    B, INPUT_DIM, HIDDEN_DIM = 24, 64, 256
    key = jax.random.PRNGKey(0)
    kx, kp = jax.random.split(key)
    x = jax.random.normal(kx, (B, INPUT_DIM), jnp.float32)
    w1, b1, w2, b2 = init_params(kp, INPUT_DIM, HIDDEN_DIM)
    ref = reference_forward(x, w1, b1, w2, b2)

    # f32 path, explicit small tile (tb=8 divides B=24 -> 3-step grid).
    out = jax.block_until_ready(domain_classifier(x, w1, b1, w2, b2, tb=8))
    assert out.shape == (B, 2), out.shape
    assert jnp.allclose(out, ref, atol=1e-3, rtol=1e-3), "f32 (tb=8) mismatch vs reference"

    # f32 path, auto tile (picks tb=16 -> 2-step grid with a ragged last block).
    out_auto = jax.block_until_ready(domain_classifier(x, w1, b1, w2, b2))
    assert out_auto.shape == (B, 2), out_auto.shape
    assert jnp.allclose(out_auto, ref, atol=1e-3, rtol=1e-3), "f32 (auto) mismatch vs reference"

    # bf16 x handed in by the caller (no wrapper-side cast of x); f32 accumulation.
    x_bf16 = x.astype(jnp.bfloat16)
    out_bf16 = jax.block_until_ready(domain_classifier(x_bf16, w1, b1, w2, b2))
    assert out_bf16.shape == (B, 2), out_bf16.shape
    assert jnp.allclose(out_bf16, ref, atol=5e-2, rtol=5e-2), "bf16 mismatch vs reference"

    print("KERNEL_OK")
</pallas_src>

<mosaic_0001>
module attributes {stable_mosaic.version = 11 : i64} {
  func.func @domain_classifier_kernel(%arg0: i32, %arg1: memref<8x64xf32, #tpu.memory_space<vmem>>, %arg2: memref<64x256xf32, #tpu.memory_space<vmem>>, %arg3: memref<1x256xf32, #tpu.memory_space<vmem>>, %arg4: memref<256x2xf32, #tpu.memory_space<vmem>>, %arg5: memref<1x2xf32, #tpu.memory_space<vmem>>, %arg6: memref<8x2xf32, #tpu.memory_space<vmem>>) attributes {dimension_semantics = [#tpu.dimension_semantics<parallel>], iteration_bounds = array<i64: 3>, scalar_prefetch = 0 : i64, scratch_operands = 0 : i64, tpu.core_type = #tpu.core_type<tc>, window_params = [{transform_indices = @transform_0, window_bounds = array<i64: 8, 64>}, {pipeline_mode = #tpu.pipeline_mode<synchronous>, transform_indices = @transform_1, window_bounds = array<i64: 64, 256>}, {pipeline_mode = #tpu.pipeline_mode<synchronous>, transform_indices = @transform_2, window_bounds = array<i64: 1, 256>}, {pipeline_mode = #tpu.pipeline_mode<synchronous>, transform_indices = @transform_3, window_bounds = array<i64: 256, 2>}, {pipeline_mode = #tpu.pipeline_mode<synchronous>, transform_indices = @transform_4, window_bounds = array<i64: 1, 2>}, {transform_indices = @transform_5, window_bounds = array<i64: 8, 2>}]} {
    %c0 = arith.constant 0 : index
    %c0_0 = arith.constant 0 : index
    %0 = vector.load %arg1[%c0, %c0_0] : memref<8x64xf32, #tpu.memory_space<vmem>>, vector<8x64xf32>
    %c0_1 = arith.constant 0 : index
    %c0_2 = arith.constant 0 : index
    %1 = vector.load %arg2[%c0_1, %c0_2] : memref<64x256xf32, #tpu.memory_space<vmem>>, vector<64x256xf32>
    %cst = arith.constant dense<0.000000e+00> : vector<8x256xf32>
    %2 = tpu.matmul %0, %1, %cst {dimension_numbers = #tpu.dot_dimension_numbers<[1], [0], [0], [1], [0, 0, 1, 1], [], []>} : vector<8x64xf32>, vector<64x256xf32>, vector<8x256xf32> -> vector<8x256xf32>
    %c0_3 = arith.constant 0 : index
    %c0_4 = arith.constant 0 : index
    %3 = vector.load %arg3[%c0_3, %c0_4] : memref<1x256xf32, #tpu.memory_space<vmem>>, vector<1x256xf32>
    %4 = vector.broadcast %3 : vector<1x256xf32> to vector<8x256xf32>
    %5 = arith.addf %2, %4 : vector<8x256xf32>
    %cst_5 = arith.constant 0.000000e+00 : f32
    %6 = vector.broadcast %cst_5 : f32 to vector<8x256xf32>
    %7 = arith.maximumf %5, %6 : vector<8x256xf32>
    %c0_6 = arith.constant 0 : index
    %c0_7 = arith.constant 0 : index
    %8 = vector.load %arg4[%c0_6, %c0_7] : memref<256x2xf32, #tpu.memory_space<vmem>>, vector<256x2xf32>
    %cst_8 = arith.constant dense<0.000000e+00> : vector<8x2xf32>
    %9 = tpu.matmul %7, %8, %cst_8 {dimension_numbers = #tpu.dot_dimension_numbers<[1], [0], [0], [1], [0, 0, 1, 1], [], []>} : vector<8x256xf32>, vector<256x2xf32>, vector<8x2xf32> -> vector<8x2xf32>
    %c0_9 = arith.constant 0 : index
    %c0_10 = arith.constant 0 : index
    %10 = vector.load %arg5[%c0_9, %c0_10] : memref<1x2xf32, #tpu.memory_space<vmem>>, vector<1x2xf32>
    %11 = vector.broadcast %10 : vector<1x2xf32> to vector<8x2xf32>
    %12 = arith.addf %9, %11 : vector<8x2xf32>
    %c0_11 = arith.constant 0 : index
    %c0_12 = arith.constant 0 : index
    %13 = vector.load %arg6[%c0_11, %c0_12] : memref<8x2xf32, #tpu.memory_space<vmem>>, vector<8x2xf32>
    tpu.vector_store %arg6[%c0_11, %c0_12], %12 {strides = array<i32>} : memref<8x2xf32, #tpu.memory_space<vmem>>, vector<8x2xf32>,
    return
  }
  func.func @transform_0(%arg0: i32) -> (i32, i32) {
    %c0_i32 = arith.constant 0 : i32
    %c0_i32_0 = arith.constant 0 : i32
    return %arg0, %c0_i32 : i32, i32
  }
  func.func @transform_1(%arg0: i32) -> (i32, i32) {
    %c0_i32 = arith.constant 0 : i32
    %c0_i32_0 = arith.constant 0 : i32
    %c0_i32_1 = arith.constant 0 : i32
    return %c0_i32, %c0_i32_0 : i32, i32
  }
  func.func @transform_2(%arg0: i32) -> (i32, i32) {
    %c0_i32 = arith.constant 0 : i32
    %c0_i32_0 = arith.constant 0 : i32
    %c0_i32_1 = arith.constant 0 : i32
    return %c0_i32, %c0_i32_0 : i32, i32
  }
  func.func @transform_3(%arg0: i32) -> (i32, i32) {
    %c0_i32 = arith.constant 0 : i32
    %c0_i32_0 = arith.constant 0 : i32
    %c0_i32_1 = arith.constant 0 : i32
    return %c0_i32, %c0_i32_0 : i32, i32
  }
  func.func @transform_4(%arg0: i32) -> (i32, i32) {
    %c0_i32 = arith.constant 0 : i32
    %c0_i32_0 = arith.constant 0 : i32
    %c0_i32_1 = arith.constant 0 : i32
    return %c0_i32, %c0_i32_0 : i32, i32
  }
  func.func @transform_5(%arg0: i32) -> (i32, i32) {
    %c0_i32 = arith.constant 0 : i32
    %c0_i32_0 = arith.constant 0 : i32
    return %arg0, %c0_i32 : i32, i32
  }
}

</mosaic_0001>

<bundles_post_ra>
// kernel: tpu_custom_call.1
= control target key start
LH: loop header
LB: loop body
LE: loop exit
PB: predicated region body
PF: predicated region fallthrough
CT: control target
= control target key end

     0   :  { %s478_s18 = smov 0   ;;  %s652_s0 = inlined_call_operand.vmem [shape: f32[24,64], index: 0, kind: input, shape index: {}]   ;;  %s653_s1 = inlined_call_operand.vmem [shape: f32[64,256], index: 1, kind: input, shape index: {}]   ;;  %s654_s2 = inlined_call_operand.vmem [shape: f32[1,256], index: 2, kind: input, shape index: {}]   ;;  %s655_s3 = inlined_call_operand.vmem [shape: f32[256,2], index: 3, kind: input, shape index: {}]   ;;  %s656_s4 = inlined_call_operand.vmem [shape: f32[1,2], index: 4, kind: input, shape index: {}]   ;;  %s657_s5 = inlined_call_operand.vmem [shape: f32[24,2], index: 5, kind: output, shape index: {}]  }
   0x1 LB: > { %s420_s19 = sadd.s32 4294967295, %s446_s18   ;;  %p424_p0 = scmp.ge.s32.totalorder %s446_s18, 1  ;;  %s446_s18 = sphi %s478_s18, %s15_s18  }
   0x2   : > { %p186_p1 = scmp.lt.s32.totalorder %s446_s18, 4 }
   0x4   : > { %p187_p2 = pnand %p424_p0, %p186_p1 }
   0x5   : > { %p212_p3 = scmp.lt.s32.totalorder (!%p187_p2), %s420_s19, 2 }
   0x6   : > { %190 = sbr.rel (%p187_p2) target bundleno = 294 (0x126), region = 40 }
   0xb   : > { %v235_v0 = vld [vmem:[%s653_s1 + $0x70] sm:$0xff]  ;;  %v233_v1 = vld [vmem:[%s653_s1 + $0x60] sm:$0xff]  ;;  %v236_v2 = vld [vmem:[%s653_s1 + $0x78] sm:$0xff]  ;;  %s659_s19 = smov (!%p212_p3, %s420_s19), 2  ;;  %vm243_vm0 = vcmask 523264   ;;  %vm365_vm1 = vcmask 15360  }
   0xc   : > { %255 = vmatpush.msra.mxu0 %v235_v0  ;;  %275 = vmatpush.msra.mxu1 %v236_v2  ;;  %v234_v3 = vld [vmem:[%s653_s1 + $0x68] sm:$0xff]  ;;  %v231_v4 = vld [vmem:[%s653_s1 + $0x50] sm:$0xff]  ;;  %v232_v5 = vld [vmem:[%s653_s1 + $0x58] sm:$0xff]  ;;  %s425_s23 = sshll.u32 %s659_s19, 3 }
   0xd   : > { %v229_v6 = vld [vmem:[%s653_s1 + $0x40] sm:$0xff]  ;;  %v230_v7 = vld [vmem:[%s653_s1 + $0x48] sm:$0xff]  ;;  %v304_v8 = vld [vmem:[%s655_s3 + $0x78] sm:$0xff]  ;;  %s215_s17 = scalar_lea.vmem %s652_s0, %s425_s23  ;;  %s219_s12 = scalar_lea.vmem %s657_s5, %s425_s23 }
   0xe   : > { %256 = vmatpush.msra.mxu0 %v233_v1  ;;  %276 = vmatpush.msra.mxu1 %v234_v3  ;;  %v303_v9 = vld [vmem:[%s655_s3 + $0x70] sm:$0xff]  ;;  %v228_v11 = vld [vmem:[%s653_s1 + $0x38] sm:$0xff]  ;;  %v302_v13 = vld [vmem:[%s655_s3 + $0x68] sm:$0xff] }
   0xf   : > { %v227_v10 = vld [vmem:[%s653_s1 + $0x30] sm:$0xff]  ;;  %325 = vmatpush.msra.mxu2 %v304_v8  ;;  %v320_v12 = vld [vmem:[%s655_s3 + $0xf8] sm:$0xff]  ;;  %v225_v15 = vld [vmem:[%s653_s1 + $0x20] sm:$0xff] }
  0x10   : > { %257 = vmatpush.msra.mxu0 %v231_v4  ;;  %277 = vmatpush.msra.mxu1 %v232_v5  ;;  %v319_v14 = vld [vmem:[%s655_s3 + $0xf0] sm:$0xff]  ;;  %v226_v16 = vld [vmem:[%s653_s1 + $0x28] sm:$0xff]  ;;  %v301_v17 = vld [vmem:[%s655_s3 + $0x60] sm:$0xff] }
  0x11   : > { %326 = vmatpush.msra.mxu2 %v303_v9  ;;  %345 = vmatpush.msra.mxu3 %v320_v12  ;;  %v318_v18 = vld [vmem:[%s655_s3 + $0xe8] sm:$0xff]  ;;  %v223_v19 = vld [vmem:[%s653_s1 + $0x10] sm:$0xff]  ;;  %v224_v20 = vld [vmem:[%s653_s1 + $0x18] sm:$0xff] }
  0x12   : > { %258 = vmatpush.msra.mxu0 %v229_v6  ;;  %278 = vmatpush.msra.mxu1 %v230_v7  ;;  %v300_v21 = vld [vmem:[%s655_s3 + $0x58] sm:$0xff]  ;;  %v317_v22 = vld [vmem:[%s655_s3 + $0xe0] sm:$0xff]  ;;  %v222_v24 = vld [vmem:[%s653_s1 + $0x8] sm:$0xff] }
  0x13   : > { %327 = vmatpush.msra.mxu2 %v302_v13  ;;  %346 = vmatpush.msra.mxu3 %v319_v14  ;;  %v221_v23 = vld [vmem:[%s653_s1] sm:$0xff]  ;;  %v299_v26 = vld [vmem:[%s655_s3 + $0x50] sm:$0xff]  ;;  %v316_v27 = vld [vmem:[%s655_s3 + $0xd8] sm:$0xff] }
  0x14   : > { %259 = vmatpush.msra.mxu0 %v227_v10  ;;  %279 = vmatpush.msra.mxu1 %v228_v11  ;;  %v220_v25 = vld [vmem:[%s215_s17] sm:$0xff]  ;;  %v298_v28 = vld [vmem:[%s655_s3 + $0x48] sm:$0xff]  ;;  %v315_v29 = vld [vmem:[%s655_s3 + $0xd0] sm:$0xff] }
  0x15   : > { %328 = vmatpush.msra.mxu2 %v301_v17  ;;  %347 = vmatpush.msra.mxu3 %v318_v18  ;;  %v297_v30 = vld [vmem:[%s655_s3 + $0x40] sm:$0xff]  ;;  %v314_v31 = vld [vmem:[%s655_s3 + $0xc8] sm:$0xff]  ;;  %v296_v32 = vld [vmem:[%s655_s3 + $0x38] sm:$0xff] }
  0x16   : > { %260 = vmatpush.msra.mxu0 %v225_v15  ;;  %280 = vmatpush.msra.mxu1 %v226_v16  ;;  %v313_v33 = vld [vmem:[%s655_s3 + $0xc0] sm:$0xff]  ;;  %v295_v34 = vld [vmem:[%s655_s3 + $0x30] sm:$0xff]  ;;  %v312_v35 = vld [vmem:[%s655_s3 + $0xb8] sm:$0xff] }
  0x17   : > { %329 = vmatpush.msra.mxu2 %v300_v21  ;;  %348 = vmatpush.msra.mxu3 %v317_v22  ;;  %v294_v36 = vld [vmem:[%s655_s3 + $0x28] sm:$0xff]  ;;  %v311_v37 = vld [vmem:[%s655_s3 + $0xb0] sm:$0xff]  ;;  %v293_v38 = vld [vmem:[%s655_s3 + $0x20] sm:$0xff] }
  0x18   : > { %261 = vmatpush.msra.mxu0 %v223_v19  ;;  %281 = vmatpush.msra.mxu1 %v224_v20  ;;  %v310_v39 = vld [vmem:[%s655_s3 + $0xa8] sm:$0xff]  ;;  %v292_v40 = vld [vmem:[%s655_s3 + $0x18] sm:$0xff]  ;;  %v309_v41 = vld [vmem:[%s655_s3 + $0xa0] sm:$0xff] }
  0x19   : > { %330 = vmatpush.msra.mxu2 %v299_v26  ;;  %349 = vmatpush.msra.mxu3 %v316_v27  ;;  %v291_v42 = vld [vmem:[%s655_s3 + $0x10] sm:$0xff]  ;;  %v308_v43 = vld [vmem:[%s655_s3 + $0x98] sm:$0xff]  ;;  %v290_v44 = vld [vmem:[%s655_s3 + $0x8] sm:$0xff] }
  0x1a   : > { %262 = vmatpush.msra.mxu0 %v221_v23  ;;  %282 = vmatpush.msra.mxu1 %v222_v24  ;;  %v307_v45 = vld [vmem:[%s655_s3 + $0x90] sm:$0xff]  ;;  %v289_v46 = vld [vmem:[%s655_s3] sm:$0xff]  ;;  %v306_v47 = vld [vmem:[%s655_s3 + $0x88] sm:$0xff] }
  0x1b   : > { %427 = vmatmul.msk.f32.vlgmr.msra.gmra.mxu0 %vm243_vm0, %v220_v25  ;;  %428 = vmatmul.msk.f32.vlgmr.msra.gmra.mxu1 %vm243_vm0, %v220_v25  ;;  %v305_v48 = vld [vmem:[%s655_s3 + $0x80] sm:$0xff] }
  0x1c   : > { %331 = vmatpush.msra.mxu2 %v298_v28  ;;  %350 = vmatpush.msra.mxu3 %v315_v29  ;;  %v237_v49 = vld [vmem:[%s654_s2] sm:$0x3] }
  0x1d   : > { %v239_v50 = vperm.slane %v237_v49, 0  ;;  %v240_v51 = vperm.slane %v237_v49, 1  ;;  %v439_v58 = vld [vmem:[%s656_s4] ss:$0 sm:$0xff] }
  0x1e   : > { %332 = vmatpush.msra.mxu2 %v297_v30  ;;  %351 = vmatpush.msra.mxu3 %v314_v31 }
  0x20   : > { %333 = vmatpush.msra.mxu2 %v296_v32  ;;  %352 = vmatpush.msra.mxu3 %v313_v33 }
  0x22   : > { %334 = vmatpush.msra.mxu2 %v295_v34  ;;  %353 = vmatpush.msra.mxu3 %v312_v35 }
  0x24   : > { %335 = vmatpush.msra.mxu2 %v294_v36  ;;  %354 = vmatpush.msra.mxu3 %v311_v37 }
  0x26   : > { %336 = vmatpush.msra.mxu2 %v293_v38  ;;  %355 = vmatpush.msra.mxu3 %v310_v39 }
  0x28   : > { %337 = vmatpush.msra.mxu2 %v292_v40  ;;  %356 = vmatpush.msra.mxu3 %v309_v41 }
  0x2a   : > { %338 = vmatpush.msra.mxu2 %v291_v42  ;;  %357 = vmatpush.msra.mxu3 %v308_v43 }
  0x2c   : > { %339 = vmatpush.msra.mxu2 %v290_v44  ;;  %358 = vmatpush.msra.mxu3 %v307_v45 }
  0x2e   : > { %340 = vmatpush.msra.mxu2 %v289_v46  ;;  %359 = vmatpush.msra.mxu3 %v306_v47 }
  0x30   : > { %360 = vmatpush.msra.mxu3 %v305_v48 }
  0x98   : > { %v264_v52 = vpop.f32.mrf.mxu0  ;;  %v284_v53 = vpop.f32.mrf.mxu1 }
  0x99   : > { %v265_v54 = vadd.f32 %v264_v52, %v239_v50  ;;  %v285_v55 = vadd.f32 %v284_v53, %v240_v51 }
  0x9b   : > { %v287_v56 = vmax.f32 %v265_v54, 0.0  ;;  %v288_v57 = vmax.f32 %v285_v55, 0.0 }
  0x9d   : > { %341 = vmatmul.f32.vlgmr.msra.gmra.mxu2 %v287_v56  ;;  %361 = vmatmul.f32.vlgmr.msra.gmra.mxu3 %v288_v57 }
 0x120   : > { %v342_v59 = vpop.f32.mrf.mxu2  ;;  %v362_v60 = vpop.f32.mrf.mxu3 }
 0x121   : > { %v343_v61 = vadd.f32 %v439_v58, %v342_v59 }
 0x123   : > { %v363_v62 = vadd.f32 %v362_v60, %v343_v61 }
 0x125   : > { %366 = vst.msk [vmem:[%s219_s12] sm:$0xff] %vm365_vm1, %v363_v62 }
 0x126 PF: > { %s15_s18 = sadd.s32 1, %s446_s18  }
 0x127   : > { %p12_p4 = scmp.ge.s32.totalorder %s15_s18, 5  }
 0x129   :  { %14 = sbr.rel (!%p12_p4) target bundleno = 1 (0x1), region = 70 }

</bundles_post_ra>
